<compile_context>
chip_gen: v5e
topology: v5e:2x2
jax: 0.10.0
libtpu: 0.0.40
codegen_flags: <defaults>
</compile_context>

<pallas_src>
import functools

import jax
import jax.numpy as jnp
from jax import lax
from jax.experimental import pallas as pl
from jax.experimental.pallas import tpu as pltpu


def _round_up(x, m):
    return (x + m - 1) // m * m


def _dot_bt(w, x):
    """w: (out, in), x: (bt, in) -> (out, bt).

    Contracts over `in` (last dim of both operands) on the MXU with f32
    accumulation, keeping the batch on the lane axis of the result.
    """
    return lax.dot_general(w, x, (((1,), (1,)), ((), ())),
                           preferred_element_type=jnp.float32)


def _mlp_kernel(x_ref,
                w1_ref, b1_ref, w2_ref, b2_ref, w3_ref, b3_ref,
                w4_ref, b4_ref, w5_ref, b5_ref,
                o_ref, *, relu, compute_dtype):
    """Full 5-layer MLP on one batch tile (batch on the lane axis).

    x_ref: (bt, D) f32 native-layout tile (cast to compute_dtype on the VPU).
    Weights w_k are (out, in) (PyTorch layout), biases are (out, 1) f32 columns.
    Matmuls run on the MXU in compute_dtype with f32 accumulation.
    """
    x = x_ref[...].astype(compute_dtype)                        # (bt, D)

    # Layer 1: contract over D -> (1024, bt).
    h = _dot_bt(w1_ref[...], x) + b1_ref[...]
    if relu:
        h = jnp.maximum(h, 0.0)
    h = h.astype(compute_dtype)
    # Dropout(0.2): identity at inference.

    def layer(h, w_ref, b_ref, act):
        acc = jnp.dot(w_ref[...], h, preferred_element_type=jnp.float32)
        acc = acc + b_ref[...]                                  # lane broadcast
        if act:
            acc = jnp.maximum(acc, 0.0)
        return acc

    h = layer(h, w2_ref, b2_ref, relu).astype(compute_dtype)   # (128, bt)
    # Dropout(0.2): identity at inference.
    h = layer(h, w3_ref, b3_ref, relu).astype(compute_dtype)   # (64, bt)
    # Dropout(0.1): identity at inference.
    h = layer(h, w4_ref, b4_ref, relu).astype(compute_dtype)   # (16, bt)
    out = layer(h, w5_ref, b5_ref, False)                       # (1, bt) f32
    o_ref[...] = out.astype(o_ref.dtype)


def _gemv_kernel(x_ref, w_ref, b_ref, o_ref):
    """Collapsed affine map (relu=False): o = w_eff @ x^T + b_eff, all f32."""
    acc = _dot_bt(w_ref[...], x_ref[...])                       # (1, bt) f32
    o_ref[...] = (acc + b_ref[...]).astype(o_ref.dtype)


def fuse_linear_params(params):
    """Collapse the 5 Linear layers into one affine map (valid when relu=False;
    eval-mode dropout is the identity).

    Call ONCE when parameters are loaded, NOT per forward call -- the collapse
    itself costs far more FLOPs than the fused GEMV for small/medium batches.
    Returns {'w_eff': (1, D) f32, 'b_eff': (1, 1) f32}.
    """
    w_eff = params["w1"]
    b_eff = params["b1"].reshape(-1, 1)
    for k in range(2, 6):
        wk = params[f"w{k}"]
        w_eff = wk @ w_eff
        b_eff = wk @ b_eff + params[f"b{k}"].reshape(-1, 1)
    return {"w_eff": w_eff.astype(jnp.float32),
            "b_eff": b_eff.astype(jnp.float32)}


def _pick_batch_tile(B, batch_tile):
    """Largest multiple of 128 <= batch_tile such that the parallel grid axis
    has >= 2 steps whenever B > 128 (keeps both v7x TensorCores busy)."""
    bt = max(128, _round_up(-(-B // 2), 128))
    return min(batch_tile, bt)


def aesthetic_predictor(x, params, *, relu=False, batch_tile=512,
                        compute_dtype=jnp.bfloat16):
    """Run the AestheticPredictor forward pass via Pallas TPU kernels.

    Args:
      x: (B, D) float32 features (native layout; read directly, never
        transposed / padded / pre-cast on the host side).
      params: dict with w1..w5 of shape (out, in) and b1..b5 of shape (out,)
        (PyTorch nn.Linear layout). If relu=False and the dict also contains
        'w_eff'/'b_eff' (from fuse_linear_params), the collapsed single-GEMV
        f32 path is used.
      relu: whether the ReLU variant of the module is used.
      batch_tile: max batch rows per grid step (multiple of 128).
      compute_dtype: MXU input dtype for the 5-layer path (accum is f32).
    Returns:
      (B, 1) float32 scores.
    """
    x = x.astype(jnp.float32)
    B, D = x.shape
    assert batch_tile % 128 == 0, "batch_tile must be a multiple of 128"
    bt = _pick_batch_tile(B, batch_tile)
    grid = (pl.cdiv(B, bt),)

    # Native-layout input tile. The last grid step may be a partial block: its
    # out-of-bounds rows hold undefined data, but they only feed out-of-bounds
    # output lanes, which Pallas masks on writeback and we slice off below.
    # (If input DMA ever shows as exposed, bump only this spec to
    #  pipeline_mode=pl.Buffered(3); the weight residents stay as-is.)
    x_spec = pl.BlockSpec((bt, D), lambda i: (i, 0))
    o_spec = pl.BlockSpec((1, bt), lambda i: (0, i))
    # Whole-array VMEM residents: fetched once, single-buffered, no pipelining.
    vmem_full = pl.BlockSpec(memory_space=pltpu.MemorySpace.VMEM)

    compiler_params = pltpu.CompilerParams(
        dimension_semantics=("parallel",),
        vmem_limit_bytes=32 * 1024 * 1024,
    )

    if not relu and "w_eff" in params:
        # Collapsed affine path (precomputed once via fuse_linear_params).
        out = pl.pallas_call(
            _gemv_kernel,
            out_shape=jax.ShapeDtypeStruct((1, B), jnp.float32),
            grid_spec=pltpu.PrefetchScalarGridSpec(
                num_scalar_prefetch=0,
                grid=grid,
                in_specs=[x_spec, vmem_full, vmem_full],
                out_specs=o_spec,
            ),
            compiler_params=compiler_params,
        )(x, params["w_eff"], params["b_eff"])
    else:
        kernel = functools.partial(_mlp_kernel, relu=relu,
                                   compute_dtype=compute_dtype)
        flat = []
        for k in range(1, 6):
            flat.append(params[f"w{k}"].astype(compute_dtype))
            flat.append(params[f"b{k}"].reshape(-1, 1).astype(jnp.float32))
        out = pl.pallas_call(
            kernel,
            out_shape=jax.ShapeDtypeStruct((1, B), jnp.float32),
            grid_spec=pltpu.PrefetchScalarGridSpec(
                num_scalar_prefetch=0,
                grid=grid,
                in_specs=[x_spec] + [vmem_full] * 10,
                out_specs=o_spec,
            ),
            compiler_params=compiler_params,
        )(x, *flat)

    return out.reshape(B, 1)


def init_params(key, input_size):
    """Deterministic synthetic parameters in PyTorch nn.Linear layout:
    w_k: (out_features, in_features), b_k: (out_features,)."""
    dims = [input_size, 1024, 128, 64, 16, 1]
    params = {}
    for k in range(5):
        key, kw, kb = jax.random.split(key, 3)
        fan_in, fan_out = dims[k], dims[k + 1]
        scale = 1.0 / jnp.sqrt(jnp.float32(fan_in))
        params[f"w{k + 1}"] = jax.random.uniform(
            kw, (fan_out, fan_in), jnp.float32, minval=-scale, maxval=scale)
        params[f"b{k + 1}"] = jax.random.uniform(
            kb, (fan_out,), jnp.float32, minval=-scale, maxval=scale)
    return params


def reference_forward(x, params, relu=False):
    """Plain-JAX f32 reference of the PyTorch forward (dropout = eval/identity)."""
    h = x
    for k in range(1, 6):
        h = h @ params[f"w{k}"].T + params[f"b{k}"]
        if relu and k < 5:
            h = jnp.maximum(h, 0.0)
    return h


if __name__ == "__main__":
    key = jax.random.PRNGKey(0)

    INPUT_SIZE = 64   # small synthetic feature dim (CLIP would be 768)
    BATCH = 300       # ragged (not a multiple of the tile) on purpose

    kp, kx = jax.random.split(key)
    params = init_params(kp, INPUT_SIZE)
    x = jax.random.normal(kx, (BATCH, INPUT_SIZE), jnp.float32)

    # Collapse the linear stack ONCE at load time (relu=False fused path).
    fused_params = dict(params, **fuse_linear_params(params))

    # (params, relu, abs tolerance)
    cases = [
        (fused_params, False, 2e-3),   # collapsed single-GEMV path, all f32
        (params, False, 5e-2),         # full 5-layer path, bf16 MXU, no ReLU
        (params, True, 5e-2),          # full 5-layer path, bf16 MXU, ReLU
    ]
    for p, relu, tol in cases:
        out = aesthetic_predictor(x, p, relu=relu, batch_tile=512)
        out = jax.block_until_ready(out)
        ref = reference_forward(x, params, relu=relu)
        assert out.shape == (BATCH, 1), out.shape
        err = float(jnp.max(jnp.abs(out - ref)))
        assert err < tol, ("mismatch vs reference", relu, err)

    print("KERNEL_OK")
</pallas_src>

<mosaic_0001>
module attributes {stable_mosaic.version = 11 : i64} {
  func.func @_gemv_kernel(%arg0: i32, %arg1: memref<256x64xf32, #tpu.memory_space<vmem>>, %arg2: memref<1x64xf32, #tpu.memory_space<vmem>>, %arg3: memref<1x1xf32, #tpu.memory_space<vmem>>, %arg4: memref<1x256xf32, #tpu.memory_space<vmem>>) attributes {dimension_semantics = [#tpu.dimension_semantics<parallel>], iteration_bounds = array<i64: 2>, scalar_prefetch = 0 : i64, scratch_operands = 0 : i64, tpu.core_type = #tpu.core_type<tc>, window_params = [{transform_indices = @transform_0, window_bounds = array<i64: 256, 64>}, {pipeline_mode = #tpu.pipeline_mode<synchronous>, transform_indices = @transform_1, window_bounds = array<i64: 1, 64>}, {pipeline_mode = #tpu.pipeline_mode<synchronous>, transform_indices = @transform_2, window_bounds = array<i64: 1, 1>}, {transform_indices = @transform_3, window_bounds = array<i64: 1, 256>}]} {
    %c0 = arith.constant 0 : index
    %c0_0 = arith.constant 0 : index
    %0 = vector.load %arg2[%c0, %c0_0] : memref<1x64xf32, #tpu.memory_space<vmem>>, vector<1x64xf32>
    %c0_1 = arith.constant 0 : index
    %c0_2 = arith.constant 0 : index
    %1 = vector.load %arg1[%c0_1, %c0_2] : memref<256x64xf32, #tpu.memory_space<vmem>>, vector<256x64xf32>
    %cst = arith.constant dense<0.000000e+00> : vector<1x256xf32>
    %2 = tpu.matmul %0, %1, %cst {dimension_numbers = #tpu.dot_dimension_numbers<[1], [1], [0], [0], [0, 0, 1, 0], [], []>} : vector<1x64xf32>, vector<256x64xf32>, vector<1x256xf32> -> vector<1x256xf32>
    %c0_3 = arith.constant 0 : index
    %c0_4 = arith.constant 0 : index
    %3 = vector.load %arg3[%c0_3, %c0_4] : memref<1x1xf32, #tpu.memory_space<vmem>>, vector<1x1xf32>
    %4 = vector.broadcast %3 : vector<1x1xf32> to vector<1x256xf32>
    %5 = arith.addf %2, %4 : vector<1x256xf32>
    %c0_5 = arith.constant 0 : index
    %c0_6 = arith.constant 0 : index
    %6 = vector.load %arg4[%c0_5, %c0_6] : memref<1x256xf32, #tpu.memory_space<vmem>>, vector<1x256xf32>
    tpu.vector_store %arg4[%c0_5, %c0_6], %5 {strides = array<i32>} : memref<1x256xf32, #tpu.memory_space<vmem>>, vector<1x256xf32>,
    return
  }
  func.func @transform_0(%arg0: i32) -> (i32, i32) {
    %c0_i32 = arith.constant 0 : i32
    %c0_i32_0 = arith.constant 0 : i32
    return %arg0, %c0_i32 : i32, i32
  }
  func.func @transform_1(%arg0: i32) -> (i32, i32) {
    %c0_i32 = arith.constant 0 : i32
    %c0_i32_0 = arith.constant 0 : i32
    %c0_i32_1 = arith.constant 0 : i32
    return %c0_i32, %c0_i32_0 : i32, i32
  }
  func.func @transform_2(%arg0: i32) -> (i32, i32) {
    %c0_i32 = arith.constant 0 : i32
    %c0_i32_0 = arith.constant 0 : i32
    %c0_i32_1 = arith.constant 0 : i32
    return %c0_i32, %c0_i32_0 : i32, i32
  }
  func.func @transform_3(%arg0: i32) -> (i32, i32) {
    %c0_i32 = arith.constant 0 : i32
    %c0_i32_0 = arith.constant 0 : i32
    return %c0_i32, %arg0 : i32, i32
  }
}

</mosaic_0001>

<bundles_post_ra>
// kernel: tpu_custom_call.1
= control target key start
LH: loop header
LB: loop body
LE: loop exit
PB: predicated region body
PF: predicated region fallthrough
CT: control target
= control target key end

     0   :  { %s833_s0 = inlined_call_operand.vmem [shape: f32[300,64], index: 0, kind: input, shape index: {}]   ;;  %s834_s1 = inlined_call_operand.vmem [shape: f32[1,64], index: 1, kind: input, shape index: {}]   ;;  %s835_s2 = inlined_call_operand.<no memory space> [shape: f32[1,1], index: 2, kind: input, shape index: {}]   ;;  %s836_s3 = inlined_call_operand.hbm [shape: f32[1,300], index: 3, kind: output, shape index: {}]  }
   0x1   :  { %v8_v0 = vstv %s835_s2 }
   0x2   :  { %9 = vst [vmem:[#allocation2] sm:$0x1] %v8_v0 }
   0x3   :  { %10 = vsyncpa [#allocation4], 0 }
   0x4   :  { %12 = vsyncpa [#allocation4 + $0x1], 0  ;;  %s654_s14 = smov 0   ;;  %s656_s15 = smov 0  }
   0x5   :  { %s658_s16 = smov 0   ;;  %s660_s17 = smov 0  }
   0x6 LB: > { %s675_s2 = sadd.s32 4294967295, %s627_s17   ;;  %s468_s18 = sadd.s32 4294967294, %s627_s17   ;;  %s627_s17 = sphi %s660_s17, %s842_s17   ;;  %s623_s16 = sphi %s658_s16, %s841_s16   ;;  %s619_s15 = sphi %s656_s15, %s840_s15   ;;  %s615_s14 = sphi %s654_s14, %s839_s14  }
   0x7   : > { %s679_s19 = sadd.s32 1, %s627_s17   ;;  %s93_s20 = sadd.s32 1, %s623_s16 }
   0x8   : > { %s90_s21 = ssub.s32 %s627_s17, %s679_s19  ;;  %p103_p0 = scmp.ne.s32.totalorder %s623_s16, %s619_s15 }
   0x9   : > { %p91_p1 = scmp.eq.s32.totalorder %s90_s21, 0  ;;  %p104_p2 = scmp.eq.s32.totalorder %s675_s2, 1 }
   0xa   : > { %p109_p3 = scmp.ne.s32.totalorder %s619_s15, %s615_s14  ;;  %p110_p4 = scmp.eq.s32.totalorder %s468_s18, 1 }
   0xb   : > { %s690_s22 = scalar_select %p91_p1, %s623_s16, %s93_s20  }
   0xc   : > { %p692_p5 = por %p104_p2, %p103_p0  ;;  %p696_p6 = por %p110_p4, %p109_p3 }
   0xd   : > { %p471_p7 = scmp.ge.s32.totalorder %s627_s17, 1  ;;  %p151_p8 = scmp.lt.s32.totalorder %s627_s17, 3 }
   0xf   : > { %p152_p9 = pnand %p471_p7, %p151_p8 }
  0x10   : > { %s473_s25 = sshll.u32 (!%p152_p9), %s675_s2, 5  ;;  %s176_s5 = sand.u32 (!%p152_p9), 1, %s619_s15  }
  0x11   : > { %155 = sbr.rel (%p152_p9) target bundleno = 251 (0xfb), region = 32  ;;  %p184_p10 = scmp.lt.s32.totalorder (!%p152_p9), %s473_s25, 37 }
  0x12   : > { %s472_s6 = sshll.u32 (!%p152_p9), %s176_s5, 1  ;;  %s778_s8 = scalar_lea.sflag (!%p152_p9), [#allocation4], %s176_s5 }
  0x13   : > { %s178_s7 = scalar_lea.vmem (!%p152_p9), [#allocation3], %s472_s6 }
  0x16   : > { %s844_s25 = smov (!%p184_p10, %s473_s25), 37  ;;  %vm237_vm0 = vcmask 523264   ;;  %v230_v19 = vld [vmem:[#allocation2] sm:$0x1]  ;;  %v629_v22 = vmov 0   ;;  %v383_v38 = vlaneseq  ;;  %vm380_vm1 = vcmask 1040384  }
  0x17   : > { %s474_s26 = sshll.u32 %s844_s25, 3  ;;  %553 = vset.pattern.permute.xlu0 %v629_v22  ;;  %v197_v35 = vld [vmem:[%s834_s1] sm:$0x1]  ;;  %s510_s9 = sshll.u32 (%p692_p5), %s675_s2, 1 }
  0x18   : > { %s706_s29 = scalar_lea.vmem %s833_s0, %s474_s26  ;;  %233 = vperm.xlu0 %553, %v230_v19   ;;  %vm385_vm2 = vcmp.lt.s32.totalorder %v383_v38, 256  ;;  %s397_s10 = ssub.s32 (%p692_p5), 3, %s510_s9 }
  0x19   : > { %v213_v1 = vld [vmem:[%s706_s29 + $0x78] sm:$0xff]  ;;  %v212_v3 = vld [vmem:[%s706_s29 + $0x70] sm:$0xff]  ;;  %v211_v5 = vld [vmem:[%s706_s29 + $0x68] sm:$0xff]  ;;  %p398_p11 = scmp.lt.s32.totalorder (%p692_p5), %s397_s10, 2 }
  0x1a   : > { %v229_v2 = vld [vmem:[%s706_s29 + $0xf8] sm:$0xff]  ;;  %475 = vmatpush.xpose.msk.msra.mxu0 %vm237_vm0, %v213_v1  ;;  %v228_v4 = vld [vmem:[%s706_s29 + $0xf0] sm:$0xff]  ;;  %v227_v6 = vld [vmem:[%s706_s29 + $0xe8] sm:$0xff] }
  0x1b   : > { %492 = vmatpush.xpose.msk.msra.mxu1 %vm237_vm0, %v229_v2  ;;  %v210_v7 = vld [vmem:[%s706_s29 + $0x60] sm:$0xff]  ;;  %v209_v9 = vld [vmem:[%s706_s29 + $0x58] sm:$0xff]  ;;  %v208_v11 = vld [vmem:[%s706_s29 + $0x50] sm:$0xff] }
  0x1c   : > { %v226_v8 = vld [vmem:[%s706_s29 + $0xe0] sm:$0xff]  ;;  %v225_v10 = vld [vmem:[%s706_s29 + $0xd8] sm:$0xff]  ;;  %v224_v12 = vld [vmem:[%s706_s29 + $0xd0] sm:$0xff] }
  0x1d   : > { %v207_v13 = vld [vmem:[%s706_s29 + $0x48] sm:$0xff]  ;;  %v206_v15 = vld [vmem:[%s706_s29 + $0x40] sm:$0xff]  ;;  %v205_v17 = vld [vmem:[%s706_s29 + $0x38] sm:$0xff] }
  0x1e   : > { %476 = vmatpush.xpose.msk.msra.mxu0 %vm237_vm0, %v212_v3  ;;  %v223_v14 = vld [vmem:[%s706_s29 + $0xc8] sm:$0xff]  ;;  %v222_v16 = vld [vmem:[%s706_s29 + $0xc0] sm:$0xff]  ;;  %v221_v18 = vld [vmem:[%s706_s29 + $0xb8] sm:$0xff] }
  0x1f   : > { %493 = vmatpush.xpose.msk.msra.mxu1 %vm237_vm0, %v228_v4  ;;  %v204_v20 = vld [vmem:[%s706_s29 + $0x30] sm:$0xff]  ;;  %v203_v23 = vld [vmem:[%s706_s29 + $0x28] sm:$0xff]  ;;  %v202_v25 = vld [vmem:[%s706_s29 + $0x20] sm:$0xff] }
  0x20   : > { %v220_v21 = vld [vmem:[%s706_s29 + $0xb0] sm:$0xff]  ;;  %v219_v24 = vld [vmem:[%s706_s29 + $0xa8] sm:$0xff]  ;;  %v218_v26 = vld [vmem:[%s706_s29 + $0xa0] sm:$0xff] }
  0x21   : > { %v201_v27 = vld [vmem:[%s706_s29 + $0x18] sm:$0xff]  ;;  %v200_v29 = vld [vmem:[%s706_s29 + $0x10] sm:$0xff]  ;;  %v199_v31 = vld [vmem:[%s706_s29 + $0x8] sm:$0xff] }
  0x22   : > { %477 = vmatpush.xpose.msk.msra.mxu0 %vm237_vm0, %v211_v5  ;;  %v217_v28 = vld [vmem:[%s706_s29 + $0x98] sm:$0xff]  ;;  %v216_v30 = vld [vmem:[%s706_s29 + $0x90] sm:$0xff]  ;;  %v215_v32 = vld [vmem:[%s706_s29 + $0x88] sm:$0xff] }
  0x23   : > { %494 = vmatpush.xpose.msk.msra.mxu1 %vm237_vm0, %v227_v6  ;;  %v198_v33 = vld [vmem:[%s706_s29] sm:$0xff] }
  0x24   : > { %v214_v34 = vld [vmem:[%s706_s29 + $0x80] sm:$0xff] }
  0x26   : > { %478 = vmatpush.xpose.msk.msra.mxu0 %vm237_vm0, %v210_v7 }
  0x27   : > { %495 = vmatpush.xpose.msk.msra.mxu1 %vm237_vm0, %v226_v8 }
  0x2a   : > { %479 = vmatpush.xpose.msk.msra.mxu0 %vm237_vm0, %v209_v9 }
  0x2b   : > { %496 = vmatpush.xpose.msk.msra.mxu1 %vm237_vm0, %v225_v10 }
  0x2e   : > { %480 = vmatpush.xpose.msk.msra.mxu0 %vm237_vm0, %v208_v11 }
  0x2f   : > { %497 = vmatpush.xpose.msk.msra.mxu1 %vm237_vm0, %v224_v12 }
  0x32   : > { %481 = vmatpush.xpose.msk.msra.mxu0 %vm237_vm0, %v207_v13 }
  0x33   : > { %498 = vmatpush.xpose.msk.msra.mxu1 %vm237_vm0, %v223_v14 }
  0x36   : > { %482 = vmatpush.xpose.msk.msra.mxu0 %vm237_vm0, %v206_v15 }
  0x37   : > { %499 = vmatpush.xpose.msk.msra.mxu1 %vm237_vm0, %v222_v16 }
  0x3a   : > { %483 = vmatpush.xpose.msk.msra.mxu0 %vm237_vm0, %v205_v17 }
  0x3b   : > { %500 = vmatpush.xpose.msk.msra.mxu1 %vm237_vm0, %v221_v18 }
  0x3e   : > { %484 = vmatpush.xpose.msk.msra.mxu0 %vm237_vm0, %v204_v20 }
  0x3f   : > { %501 = vmatpush.xpose.msk.msra.mxu1 %vm237_vm0, %v220_v21 }
  0x42   : > { %485 = vmatpush.xpose.msk.msra.mxu0 %vm237_vm0, %v203_v23 }
  0x43   : > { %502 = vmatpush.xpose.msk.msra.mxu1 %vm237_vm0, %v219_v24 }
  0x46   : > { %486 = vmatpush.xpose.msk.msra.mxu0 %vm237_vm0, %v202_v25 }
  0x47   : > { %503 = vmatpush.xpose.msk.msra.mxu1 %vm237_vm0, %v218_v26 }
  0x4a   : > { %487 = vmatpush.xpose.msk.msra.mxu0 %vm237_vm0, %v201_v27 }
  0x4b   : > { %504 = vmatpush.xpose.msk.msra.mxu1 %vm237_vm0, %v217_v28 }
  0x4e   : > { %488 = vmatpush.xpose.msk.msra.mxu0 %vm237_vm0, %v200_v29 }
  0x4f   : > { %505 = vmatpush.xpose.msk.msra.mxu1 %vm237_vm0, %v216_v30 }
  0x52   : > { %489 = vmatpush.xpose.msk.msra.mxu0 %vm237_vm0, %v199_v31 }
  0x53   : > { %506 = vmatpush.xpose.msk.msra.mxu1 %vm237_vm0, %v215_v32 }
  0x56   : > { %490 = vmatpush.xpose.msk.msra.mxu0 %vm237_vm0, %v198_v33 }
  0x57   : > { %507 = vmatpush.xpose.msk.msra.mxu1 %vm237_vm0, %v214_v34 }
  0x59   : > { %491 = vmatmul.msk.f32.vlgmr.msra.gmra.mxu0 %vm237_vm0, %v197_v35 }
  0x5a   : > { %508 = vmatmul.msk.f32.vlgmr.msra.gmra.mxu1 %vm237_vm0, %v197_v35 }
  0x8a   : > { %v234_v36 = vpop.permute.xlu0 %233 }
  0x8b   : > { %v236_v37 = vperm.slane %v234_v36, 0 }
  0xd6   : > { %v354_v39 = vpop.f32.mrf.mxu0 }
  0xd7   : > { %v374_v40 = vpop.f32.mrf.mxu1  ;;  %v355_v42 = vadd.f32 %v354_v39, %v236_v37 }
  0xd8   : > { %v375_v41 = vadd.f32 %v374_v40, %v236_v37 }
  0xd9   : > { %395 = sbr.rel (!%p692_p5) target bundleno = 251 (0xfb), region = 36 }
  0xda   : > { %v379_v43 = vrot.slane %v375_v41, 7 }
  0xdc   : > { %v381_v44 = vsel %vm380_vm1, %v355_v42, %v379_v43 }
  0xdd   : > { %387 = vst.msk [vmem:[%s178_s7] sm:$0x3] %vm385_vm2, %v381_v44 }
  0xde   : > { %s846_s10 = smov (!%p398_p11, %s397_s10), 2 }
  0xdf   : > { %s400_s11 = ssub.s32 2, %s846_s10 }
  0xe0   : > { %s401_s12 = sshll.u32 %s400_s11, 4 }
  0xe1   : > { %402 = vsyncadd %s778_s8, %s401_s12  ;;  %p511_p12 = scmp.ne.s32.totalorder %s846_s10, 0  ;;  %s404_s20 = scalar_lea.hbm %s836_s3, %s510_s9 }
  0xe2   : > { %s405_s21 = sshll.u32 %s846_s10, 4  ;;  %s792_s23 = sshll.u32 %s178_s7, 4  ;;  %s407_s23 = int_to_ptr.vmem [resolvable:$true] %s792_s23 }
  0xe3   : > { %s408_s2 = sshll.u32 %s404_s20, 4  ;;  %s554_s25 = sshra.s32 %s407_s23, 4  ;;  %s409_s2 = int_to_ptr.hbm [resolvable:$true] %s408_s2  ;;  %s555_s25 = int_to_ptr.vmem [resolvable:$true] %s554_s25 }
  0xe4   : > { %s556_s26 = sshrl.u32 %s405_s21, 4  ;;  %s630_s28 = smov [#allocation3]  }
  0xe5   : > { %s561_s27 = scalar_lea.vmem %s555_s25, %s556_s26  ;;  %s565_s29 = scalar_lea.vmem %s630_s28, 4 }
  0xe6   : > { %p562_p13 = scmp.ne.s32.totalorder %s555_s25, %s561_s27  ;;  %p567_p2 = scmp.lt.s32.totalorder %s565_s29, %s561_s27 }
  0xe8   : > { %p563_p0 = pnand %p562_p13, %p511_p12 }
  0xea   : > { %p564_p1 = pneg %p563_p0 }
  0xec   : > { %p569_p3 = pnand %p567_p2, %p564_p1 }
  0xee   : > { %572 = shalt.err (!%p569_p3)
}
  0xef   : > { %s573_s30 = sshra.s32 %s409_s2, 4  ;;  %s584_s7 = scalar_lea.hbm %s836_s3, 3  ;;  %s574_s30 = int_to_ptr.hbm [resolvable:$true] %s573_s30 }
  0xf0   : > { %s580_s4 = scalar_lea.hbm %s574_s30, %s556_s26  ;;  %p585_p8 = scmp.lt.s32.totalorder %s574_s30, %s836_s3 }
  0xf1   : > { %p581_p4 = scmp.ne.s32.totalorder %s574_s30, %s580_s4  ;;  %p586_p9 = scmp.lt.s32.totalorder %s584_s7, %s580_s4 }
  0xf3   : > { %p582_p5 = pnand %p581_p4, %p511_p12  ;;  %p587_p10 = por %p586_p9, %p585_p8 }
  0xf5   : > { %p583_p7 = pneg %p582_p5 }
  0xf7   : > { %p588_p11 = pnand %p587_p10, %p583_p7 }
  0xf9   : > { %591 = shalt.err (!%p588_p11)
}
  0xfa   : > { %411 = dma.vmem_to_hbm [thread:$0]  (%p511_p12), %s407_s23, %s405_s21, %s409_s2, %s778_s8  }
  0xfb PF: > { %p519_p13 = scmp.ge.s32.totalorder %s627_s17, 2  ;;  %s420_s12 = sand.u32 1, %s615_s14  }
  0xfc   : > { %s421_s13 = scalar_lea.sflag [#allocation4], %s420_s12 }
  0xfd   : > { %p516_p0 = pnand %p519_p13, %p696_p6 }
  0xff   : > { %p517_p1 = pneg %p516_p0 }
 0x101   : > { %610 = dma.done.wait (%p517_p1), %s421_s13, 32  }
 0x102   : > { %612 = vsyncadd (%p517_p1), %s421_s13, 4294967264  ;;  %p15_p2 = scmp.ge.s32.totalorder %s679_s19, 4   ;;  %s839_s14 = smov %s619_s15 }
 0x103   : > { %s840_s15 = smov %s623_s16  ;;  %s841_s16 = smov %s690_s22 }
 0x104   : > { %s842_s17 = smov %s679_s19  ;;  %17 = sbr.rel (!%p15_p2) target bundleno = 6 (0x6), region = 67 }
 0x109   :  { %427 = vsyncpa [#allocation4], 1 }
 0x10a   :  { %429 = vsyncpa [#allocation4 + $0x1], 1 }

</bundles_post_ra>
